<compile_context>
chip_gen: v5e
topology: v5e:2x2
jax: 0.10.0
libtpu: 0.0.40
codegen_flags: <defaults>
</compile_context>

<pallas_src>
import jax
import jax.numpy as jnp
import numpy as np
from jax.experimental import pallas as pl
from jax.experimental.pallas import tpu as pltpu


# ------------------------- fused LSTM + head kernel ---------------------------
def _fused_lstm_kernel(x_ref, wih_ref, whh_ref, b_ref, wfc_ref, bfc_ref,
                       tgt_ref, state_ref):
    B = state_ref.shape[0] // 2
    H = state_ref.shape[1]
    TB = x_ref.shape[0]
    T = TB // B
    prec = jax.lax.Precision.DEFAULT

    # ---- Phase 1 (off the serial path): one big input-projection matmul ----
    # (T*B, E) x (E, 4H) on the MXU, bias added once. Gate order i, f, g, o
    # packed along the lane axis (4H = 128 lanes at H = 32).
    xproj = (jnp.dot(x_ref[...], wih_ref[...],
                     preferred_element_type=jnp.float32,
                     precision=prec) + b_ref[...])            # (T*B, 4H)

    whh = whh_ref[...]                                        # (H, 4H) = W_hh.T packed

    # Lane mask selecting the g-gate quarter (lanes [2H, 3H)) for tanh.
    lane = jax.lax.broadcasted_iota(jnp.int32, (B, 4 * H), 1)
    g_mask = (lane >= 2 * H) & (lane < 3 * H)

    # ---- Phase 2: serial recurrence; (h, c) carried in registers ----
    # Static Python unroll (T is tiny) => every xproj row-slice is static and
    # the whole chain lives in a handful of vregs.
    h = jnp.zeros((B, H), jnp.float32)                        # h0 = c0 = 0 (init_hidden)
    c = jnp.zeros((B, H), jnp.float32)
    h1 = None                                                 # lstm_out[0] (t = 0 output)
    for t in range(T):
        pre = xproj[t * B:(t + 1) * B, :] + jnp.dot(
            h, whh, preferred_element_type=jnp.float32, precision=prec)  # (B, 4H)
        sig = jax.nn.sigmoid(pre)                             # one full-vreg EUP pass
        th = jnp.tanh(pre)                                    # one full-vreg EUP pass
        act = jnp.where(g_mask, th, sig)                      # VPU select
        i_g = act[:, 0 * H:1 * H]                             # static lane slices (XLU)
        f_g = act[:, 1 * H:2 * H]
        g_g = act[:, 2 * H:3 * H]
        o_g = act[:, 3 * H:4 * H]
        c = f_g * c + i_g * g_g
        h = o_g * jnp.tanh(c)
        if t == 0:
            h1 = h

    # ---- Epilogue ----
    # Fused head: hidden2target(lstm_out[0][-1]) = h1[last row] @ W_fc.T + b_fc.
    # Kept out of the recurrence so its MXU result never blocks the serial
    # pop order on v5e/v6e (MRF).
    tgt_ref[...] = (jnp.dot(h1[B - 1:B, :], wfc_ref[...],
                            preferred_element_type=jnp.float32,
                            precision=prec) + bfc_ref[...])

    # Module's hidden-state update (self.hidden = (h_T, c_T)) as ONE store.
    state_ref[...] = jnp.concatenate([h, c], axis=0)          # (2B, H)


def lstm_fused_forward(x, w_ih, w_hh, b_ih, b_hh, w_fc, b_fc):
    """x: (T, B, E) f32. Weights in PyTorch layout: (4H,E), (4H,H), (4H,), (4H,),
    (target,H), (target,). Returns (target,), ((B,H) h_T, (B,H) c_T)."""
    T, B, E = x.shape
    H = w_hh.shape[1]
    Tg = w_fc.shape[0]

    # Host-side glue (runs once under jit): transposes / gate packing.
    x_flat = x.reshape(T * B, E)
    wih_t = w_ih.T                                        # (E, 4H)  gates in lanes
    whh_t = w_hh.T                                        # (H, 4H)  gates in lanes
    bias = (b_ih + b_hh).reshape(1, 4 * H)                # (1, 4H)
    wfc_t = w_fc.T                                        # (H, Tg)
    bfc2 = b_fc.reshape(1, Tg)                            # (1, Tg)

    vmem = pl.BlockSpec(memory_space=pltpu.MemorySpace.VMEM)
    tgt, state = pl.pallas_call(
        _fused_lstm_kernel,
        out_shape=(jax.ShapeDtypeStruct((1, Tg), jnp.float32),      # head output
                   jax.ShapeDtypeStruct((2 * B, H), jnp.float32)),  # [h_T; c_T]
        in_specs=[vmem] * 6,
        out_specs=(vmem, vmem),
    )(x_flat, wih_t, whh_t, bias, wfc_t, bfc2)
    return tgt.reshape(-1), (state[:B], state[B:])


# ------------------------------ model forward ---------------------------------
def lstm_model_forward(inputs, params):
    return lstm_fused_forward(inputs, params["w_ih"], params["w_hh"],
                              params["b_ih"], params["b_hh"],
                              params["w_fc"], params["b_fc"])


def init_params(key, embedding_dim, hidden_dim, target_size):
    ks = jax.random.split(key, 6)
    k_lstm = 1.0 / np.sqrt(hidden_dim)
    k_fc = 1.0 / np.sqrt(hidden_dim)
    return {
        "w_ih": jax.random.uniform(ks[0], (4 * hidden_dim, embedding_dim),
                                   jnp.float32, -k_lstm, k_lstm),
        "w_hh": jax.random.uniform(ks[1], (4 * hidden_dim, hidden_dim),
                                   jnp.float32, -k_lstm, k_lstm),
        "b_ih": jax.random.uniform(ks[2], (4 * hidden_dim,),
                                   jnp.float32, -k_lstm, k_lstm),
        "b_hh": jax.random.uniform(ks[3], (4 * hidden_dim,),
                                   jnp.float32, -k_lstm, k_lstm),
        "w_fc": jax.random.uniform(ks[4], (target_size, hidden_dim),
                                   jnp.float32, -k_fc, k_fc),
        "b_fc": jax.random.uniform(ks[5], (target_size,),
                                   jnp.float32, -k_fc, k_fc),
    }


# ------------------------------ pure-JAX reference ----------------------------
def ref_forward(x, p):
    H = p["w_hh"].shape[1]

    def step(carry, xt):
        h, c = carry
        gates = xt @ p["w_ih"].T + h @ p["w_hh"].T + p["b_ih"] + p["b_hh"]
        i = jax.nn.sigmoid(gates[:, :H])
        f = jax.nn.sigmoid(gates[:, H:2 * H])
        g = jnp.tanh(gates[:, 2 * H:3 * H])
        o = jax.nn.sigmoid(gates[:, 3 * H:])
        c = f * c + i * g
        h = o * jnp.tanh(c)
        return (h, c), h

    B = x.shape[1]
    h0 = jnp.zeros((B, H), jnp.float32)
    c0 = jnp.zeros((B, H), jnp.float32)
    (h_fin, c_fin), outs = jax.lax.scan(step, (h0, c0), x)
    return outs[0, -1] @ p["w_fc"].T + p["b_fc"], (h_fin, c_fin)


if __name__ == "__main__":
    # module hyperparams: LSTM(embedding_dim, seq_length, hidden_dim, target_size)
    embedding_dim, seq_length, hidden_dim, target_size = 32, 8, 32, 4
    T = 8  # time length; the hidden-state batch dim equals seq_length

    key = jax.random.PRNGKey(0)
    kx, kp = jax.random.split(key)
    x = jax.random.normal(kx, (T, seq_length, embedding_dim), jnp.float32)
    params = init_params(kp, embedding_dim, hidden_dim, target_size)

    fwd = jax.jit(lstm_model_forward)
    out, (h_fin, c_fin) = fwd(x, params)
    out = jax.block_until_ready(out)

    ref_out, (ref_h, ref_c) = ref_forward(x, params)
    assert out.shape == (target_size,)
    np.testing.assert_allclose(np.asarray(out), np.asarray(ref_out),
                               rtol=1e-3, atol=1e-3)
    np.testing.assert_allclose(np.asarray(h_fin), np.asarray(ref_h),
                               rtol=1e-3, atol=1e-3)
    np.testing.assert_allclose(np.asarray(c_fin), np.asarray(ref_c),
                               rtol=1e-3, atol=1e-3)
    print("KERNEL_OK")
</pallas_src>

<mosaic_0001>
module attributes {stable_mosaic.version = 11 : i64} {
  func.func @_fused_lstm_kernel(%arg0: memref<64x32xf32, #tpu.memory_space<vmem>>, %arg1: memref<32x128xf32, #tpu.memory_space<vmem>>, %arg2: memref<32x128xf32, #tpu.memory_space<vmem>>, %arg3: memref<1x128xf32, #tpu.memory_space<vmem>>, %arg4: memref<32x4xf32, #tpu.memory_space<vmem>>, %arg5: memref<1x4xf32, #tpu.memory_space<vmem>>, %arg6: memref<1x4xf32, #tpu.memory_space<vmem>>, %arg7: memref<16x32xf32, #tpu.memory_space<vmem>>) attributes {dimension_semantics = [], scalar_prefetch = 0 : i64, scratch_operands = 0 : i64, tpu.core_type = #tpu.core_type<tc>} {
    %c0 = arith.constant 0 : index
    %c0_0 = arith.constant 0 : index
    %0 = vector.load %arg0[%c0, %c0_0] : memref<64x32xf32, #tpu.memory_space<vmem>>, vector<64x32xf32>
    %c0_1 = arith.constant 0 : index
    %c0_2 = arith.constant 0 : index
    %1 = vector.load %arg1[%c0_1, %c0_2] : memref<32x128xf32, #tpu.memory_space<vmem>>, vector<32x128xf32>
    %cst = arith.constant dense<0.000000e+00> : vector<64x128xf32>
    %2 = tpu.matmul %0, %1, %cst {dimension_numbers = #tpu.dot_dimension_numbers<[1], [0], [0], [1], [0, 0, 1, 1], [], []>} : vector<64x32xf32>, vector<32x128xf32>, vector<64x128xf32> -> vector<64x128xf32>
    %c0_3 = arith.constant 0 : index
    %c0_4 = arith.constant 0 : index
    %3 = vector.load %arg3[%c0_3, %c0_4] : memref<1x128xf32, #tpu.memory_space<vmem>>, vector<1x128xf32>
    %4 = vector.broadcast %3 : vector<1x128xf32> to vector<64x128xf32>
    %5 = arith.addf %2, %4 : vector<64x128xf32>
    %c0_5 = arith.constant 0 : index
    %c0_6 = arith.constant 0 : index
    %6 = vector.load %arg2[%c0_5, %c0_6] : memref<32x128xf32, #tpu.memory_space<vmem>>, vector<32x128xf32>
    %7 = tpu.iota {dimensions = array<i32: 1>} : vector<8x128xi32>
    %c64_i32 = arith.constant 64 : i32
    %8 = vector.broadcast %c64_i32 : i32 to vector<8x128xi32>
    %9 = arith.cmpi sge, %7, %8 : vector<8x128xi32>
    %c96_i32 = arith.constant 96 : i32
    %10 = vector.broadcast %c96_i32 : i32 to vector<8x128xi32>
    %11 = arith.cmpi slt, %7, %10 : vector<8x128xi32>
    %12 = arith.andi %9, %11 : vector<8x128xi1>
    %cst_7 = arith.constant 0.000000e+00 : f32
    %13 = vector.broadcast %cst_7 : f32 to vector<8x32xf32>
    %cst_8 = arith.constant 0.000000e+00 : f32
    %14 = vector.broadcast %cst_8 : f32 to vector<8x32xf32>
    %15 = vector.extract_strided_slice %5 {offsets = [0, 0], sizes = [8, 128], strides = [1, 1]} : vector<64x128xf32> to vector<8x128xf32>
    %cst_9 = arith.constant dense<0.000000e+00> : vector<8x128xf32>
    %16 = tpu.matmul %13, %6, %cst_9 {dimension_numbers = #tpu.dot_dimension_numbers<[1], [0], [0], [1], [0, 0, 1, 1], [], []>} : vector<8x32xf32>, vector<32x128xf32>, vector<8x128xf32> -> vector<8x128xf32>
    %17 = arith.addf %15, %16 : vector<8x128xf32>
    %18 = arith.negf %17 : vector<8x128xf32>
    %19 = math.exp %18 : vector<8x128xf32>
    %cst_10 = arith.constant 1.000000e+00 : f32
    %20 = vector.broadcast %cst_10 : f32 to vector<8x128xf32>
    %21 = arith.addf %20, %19 : vector<8x128xf32>
    %22 = arith.divf %20, %21 : vector<8x128xf32>
    %23 = math.tanh %17 : vector<8x128xf32>
    %24 = arith.select %12, %23, %22 : vector<8x128xi1>, vector<8x128xf32>
    %25 = vector.extract_strided_slice %24 {offsets = [0, 0], sizes = [8, 32], strides = [1, 1]} : vector<8x128xf32> to vector<8x32xf32>
    %26 = vector.extract_strided_slice %24 {offsets = [0, 32], sizes = [8, 32], strides = [1, 1]} : vector<8x128xf32> to vector<8x32xf32>
    %27 = vector.extract_strided_slice %24 {offsets = [0, 64], sizes = [8, 32], strides = [1, 1]} : vector<8x128xf32> to vector<8x32xf32>
    %28 = vector.extract_strided_slice %24 {offsets = [0, 96], sizes = [8, 32], strides = [1, 1]} : vector<8x128xf32> to vector<8x32xf32>
    %29 = arith.mulf %26, %14 : vector<8x32xf32>
    %30 = arith.mulf %25, %27 : vector<8x32xf32>
    %31 = arith.addf %29, %30 : vector<8x32xf32>
    %32 = math.tanh %31 : vector<8x32xf32>
    %33 = arith.mulf %28, %32 : vector<8x32xf32>
    %34 = vector.extract_strided_slice %5 {offsets = [8, 0], sizes = [8, 128], strides = [1, 1]} : vector<64x128xf32> to vector<8x128xf32>
    %cst_11 = arith.constant dense<0.000000e+00> : vector<8x128xf32>
    %35 = tpu.matmul %33, %6, %cst_11 {dimension_numbers = #tpu.dot_dimension_numbers<[1], [0], [0], [1], [0, 0, 1, 1], [], []>} : vector<8x32xf32>, vector<32x128xf32>, vector<8x128xf32> -> vector<8x128xf32>
    %36 = arith.addf %34, %35 : vector<8x128xf32>
    %37 = arith.negf %36 : vector<8x128xf32>
    %38 = math.exp %37 : vector<8x128xf32>
    %cst_12 = arith.constant 1.000000e+00 : f32
    %39 = vector.broadcast %cst_12 : f32 to vector<8x128xf32>
    %40 = arith.addf %39, %38 : vector<8x128xf32>
    %41 = arith.divf %39, %40 : vector<8x128xf32>
    %42 = math.tanh %36 : vector<8x128xf32>
    %43 = arith.select %12, %42, %41 : vector<8x128xi1>, vector<8x128xf32>
    %44 = vector.extract_strided_slice %43 {offsets = [0, 0], sizes = [8, 32], strides = [1, 1]} : vector<8x128xf32> to vector<8x32xf32>
    %45 = vector.extract_strided_slice %43 {offsets = [0, 32], sizes = [8, 32], strides = [1, 1]} : vector<8x128xf32> to vector<8x32xf32>
    %46 = vector.extract_strided_slice %43 {offsets = [0, 64], sizes = [8, 32], strides = [1, 1]} : vector<8x128xf32> to vector<8x32xf32>
    %47 = vector.extract_strided_slice %43 {offsets = [0, 96], sizes = [8, 32], strides = [1, 1]} : vector<8x128xf32> to vector<8x32xf32>
    %48 = arith.mulf %45, %31 : vector<8x32xf32>
    %49 = arith.mulf %44, %46 : vector<8x32xf32>
    %50 = arith.addf %48, %49 : vector<8x32xf32>
    %51 = math.tanh %50 : vector<8x32xf32>
    %52 = arith.mulf %47, %51 : vector<8x32xf32>
    %53 = vector.extract_strided_slice %5 {offsets = [16, 0], sizes = [8, 128], strides = [1, 1]} : vector<64x128xf32> to vector<8x128xf32>
    %cst_13 = arith.constant dense<0.000000e+00> : vector<8x128xf32>
    %54 = tpu.matmul %52, %6, %cst_13 {dimension_numbers = #tpu.dot_dimension_numbers<[1], [0], [0], [1], [0, 0, 1, 1], [], []>} : vector<8x32xf32>, vector<32x128xf32>, vector<8x128xf32> -> vector<8x128xf32>
    %55 = arith.addf %53, %54 : vector<8x128xf32>
    %56 = arith.negf %55 : vector<8x128xf32>
    %57 = math.exp %56 : vector<8x128xf32>
    %cst_14 = arith.constant 1.000000e+00 : f32
    %58 = vector.broadcast %cst_14 : f32 to vector<8x128xf32>
    %59 = arith.addf %58, %57 : vector<8x128xf32>
    %60 = arith.divf %58, %59 : vector<8x128xf32>
    %61 = math.tanh %55 : vector<8x128xf32>
    %62 = arith.select %12, %61, %60 : vector<8x128xi1>, vector<8x128xf32>
    %63 = vector.extract_strided_slice %62 {offsets = [0, 0], sizes = [8, 32], strides = [1, 1]} : vector<8x128xf32> to vector<8x32xf32>
    %64 = vector.extract_strided_slice %62 {offsets = [0, 32], sizes = [8, 32], strides = [1, 1]} : vector<8x128xf32> to vector<8x32xf32>
    %65 = vector.extract_strided_slice %62 {offsets = [0, 64], sizes = [8, 32], strides = [1, 1]} : vector<8x128xf32> to vector<8x32xf32>
    %66 = vector.extract_strided_slice %62 {offsets = [0, 96], sizes = [8, 32], strides = [1, 1]} : vector<8x128xf32> to vector<8x32xf32>
    %67 = arith.mulf %64, %50 : vector<8x32xf32>
    %68 = arith.mulf %63, %65 : vector<8x32xf32>
    %69 = arith.addf %67, %68 : vector<8x32xf32>
    %70 = math.tanh %69 : vector<8x32xf32>
    %71 = arith.mulf %66, %70 : vector<8x32xf32>
    %72 = vector.extract_strided_slice %5 {offsets = [24, 0], sizes = [8, 128], strides = [1, 1]} : vector<64x128xf32> to vector<8x128xf32>
    %cst_15 = arith.constant dense<0.000000e+00> : vector<8x128xf32>
    %73 = tpu.matmul %71, %6, %cst_15 {dimension_numbers = #tpu.dot_dimension_numbers<[1], [0], [0], [1], [0, 0, 1, 1], [], []>} : vector<8x32xf32>, vector<32x128xf32>, vector<8x128xf32> -> vector<8x128xf32>
    %74 = arith.addf %72, %73 : vector<8x128xf32>
    %75 = arith.negf %74 : vector<8x128xf32>
    %76 = math.exp %75 : vector<8x128xf32>
    %cst_16 = arith.constant 1.000000e+00 : f32
    %77 = vector.broadcast %cst_16 : f32 to vector<8x128xf32>
    %78 = arith.addf %77, %76 : vector<8x128xf32>
    %79 = arith.divf %77, %78 : vector<8x128xf32>
    %80 = math.tanh %74 : vector<8x128xf32>
    %81 = arith.select %12, %80, %79 : vector<8x128xi1>, vector<8x128xf32>
    %82 = vector.extract_strided_slice %81 {offsets = [0, 0], sizes = [8, 32], strides = [1, 1]} : vector<8x128xf32> to vector<8x32xf32>
    %83 = vector.extract_strided_slice %81 {offsets = [0, 32], sizes = [8, 32], strides = [1, 1]} : vector<8x128xf32> to vector<8x32xf32>
    %84 = vector.extract_strided_slice %81 {offsets = [0, 64], sizes = [8, 32], strides = [1, 1]} : vector<8x128xf32> to vector<8x32xf32>
    %85 = vector.extract_strided_slice %81 {offsets = [0, 96], sizes = [8, 32], strides = [1, 1]} : vector<8x128xf32> to vector<8x32xf32>
    %86 = arith.mulf %83, %69 : vector<8x32xf32>
    %87 = arith.mulf %82, %84 : vector<8x32xf32>
    %88 = arith.addf %86, %87 : vector<8x32xf32>
    %89 = math.tanh %88 : vector<8x32xf32>
    %90 = arith.mulf %85, %89 : vector<8x32xf32>
    %91 = vector.extract_strided_slice %5 {offsets = [32, 0], sizes = [8, 128], strides = [1, 1]} : vector<64x128xf32> to vector<8x128xf32>
    %cst_17 = arith.constant dense<0.000000e+00> : vector<8x128xf32>
    %92 = tpu.matmul %90, %6, %cst_17 {dimension_numbers = #tpu.dot_dimension_numbers<[1], [0], [0], [1], [0, 0, 1, 1], [], []>} : vector<8x32xf32>, vector<32x128xf32>, vector<8x128xf32> -> vector<8x128xf32>
    %93 = arith.addf %91, %92 : vector<8x128xf32>
    %94 = arith.negf %93 : vector<8x128xf32>
    %95 = math.exp %94 : vector<8x128xf32>
    %cst_18 = arith.constant 1.000000e+00 : f32
    %96 = vector.broadcast %cst_18 : f32 to vector<8x128xf32>
    %97 = arith.addf %96, %95 : vector<8x128xf32>
    %98 = arith.divf %96, %97 : vector<8x128xf32>
    %99 = math.tanh %93 : vector<8x128xf32>
    %100 = arith.select %12, %99, %98 : vector<8x128xi1>, vector<8x128xf32>
    %101 = vector.extract_strided_slice %100 {offsets = [0, 0], sizes = [8, 32], strides = [1, 1]} : vector<8x128xf32> to vector<8x32xf32>
    %102 = vector.extract_strided_slice %100 {offsets = [0, 32], sizes = [8, 32], strides = [1, 1]} : vector<8x128xf32> to vector<8x32xf32>
    %103 = vector.extract_strided_slice %100 {offsets = [0, 64], sizes = [8, 32], strides = [1, 1]} : vector<8x128xf32> to vector<8x32xf32>
    %104 = vector.extract_strided_slice %100 {offsets = [0, 96], sizes = [8, 32], strides = [1, 1]} : vector<8x128xf32> to vector<8x32xf32>
    %105 = arith.mulf %102, %88 : vector<8x32xf32>
    %106 = arith.mulf %101, %103 : vector<8x32xf32>
    %107 = arith.addf %105, %106 : vector<8x32xf32>
    %108 = math.tanh %107 : vector<8x32xf32>
    %109 = arith.mulf %104, %108 : vector<8x32xf32>
    %110 = vector.extract_strided_slice %5 {offsets = [40, 0], sizes = [8, 128], strides = [1, 1]} : vector<64x128xf32> to vector<8x128xf32>
    %cst_19 = arith.constant dense<0.000000e+00> : vector<8x128xf32>
    %111 = tpu.matmul %109, %6, %cst_19 {dimension_numbers = #tpu.dot_dimension_numbers<[1], [0], [0], [1], [0, 0, 1, 1], [], []>} : vector<8x32xf32>, vector<32x128xf32>, vector<8x128xf32> -> vector<8x128xf32>
    %112 = arith.addf %110, %111 : vector<8x128xf32>
    %113 = arith.negf %112 : vector<8x128xf32>
    %114 = math.exp %113 : vector<8x128xf32>
    %cst_20 = arith.constant 1.000000e+00 : f32
    %115 = vector.broadcast %cst_20 : f32 to vector<8x128xf32>
    %116 = arith.addf %115, %114 : vector<8x128xf32>
    %117 = arith.divf %115, %116 : vector<8x128xf32>
    %118 = math.tanh %112 : vector<8x128xf32>
    %119 = arith.select %12, %118, %117 : vector<8x128xi1>, vector<8x128xf32>
    %120 = vector.extract_strided_slice %119 {offsets = [0, 0], sizes = [8, 32], strides = [1, 1]} : vector<8x128xf32> to vector<8x32xf32>
    %121 = vector.extract_strided_slice %119 {offsets = [0, 32], sizes = [8, 32], strides = [1, 1]} : vector<8x128xf32> to vector<8x32xf32>
    %122 = vector.extract_strided_slice %119 {offsets = [0, 64], sizes = [8, 32], strides = [1, 1]} : vector<8x128xf32> to vector<8x32xf32>
    %123 = vector.extract_strided_slice %119 {offsets = [0, 96], sizes = [8, 32], strides = [1, 1]} : vector<8x128xf32> to vector<8x32xf32>
    %124 = arith.mulf %121, %107 : vector<8x32xf32>
    %125 = arith.mulf %120, %122 : vector<8x32xf32>
    %126 = arith.addf %124, %125 : vector<8x32xf32>
    %127 = math.tanh %126 : vector<8x32xf32>
    %128 = arith.mulf %123, %127 : vector<8x32xf32>
    %129 = vector.extract_strided_slice %5 {offsets = [48, 0], sizes = [8, 128], strides = [1, 1]} : vector<64x128xf32> to vector<8x128xf32>
    %cst_21 = arith.constant dense<0.000000e+00> : vector<8x128xf32>
    %130 = tpu.matmul %128, %6, %cst_21 {dimension_numbers = #tpu.dot_dimension_numbers<[1], [0], [0], [1], [0, 0, 1, 1], [], []>} : vector<8x32xf32>, vector<32x128xf32>, vector<8x128xf32> -> vector<8x128xf32>
    %131 = arith.addf %129, %130 : vector<8x128xf32>
    %132 = arith.negf %131 : vector<8x128xf32>
    %133 = math.exp %132 : vector<8x128xf32>
    %cst_22 = arith.constant 1.000000e+00 : f32
    %134 = vector.broadcast %cst_22 : f32 to vector<8x128xf32>
    %135 = arith.addf %134, %133 : vector<8x128xf32>
    %136 = arith.divf %134, %135 : vector<8x128xf32>
    %137 = math.tanh %131 : vector<8x128xf32>
    %138 = arith.select %12, %137, %136 : vector<8x128xi1>, vector<8x128xf32>
    %139 = vector.extract_strided_slice %138 {offsets = [0, 0], sizes = [8, 32], strides = [1, 1]} : vector<8x128xf32> to vector<8x32xf32>
    %140 = vector.extract_strided_slice %138 {offsets = [0, 32], sizes = [8, 32], strides = [1, 1]} : vector<8x128xf32> to vector<8x32xf32>
    %141 = vector.extract_strided_slice %138 {offsets = [0, 64], sizes = [8, 32], strides = [1, 1]} : vector<8x128xf32> to vector<8x32xf32>
    %142 = vector.extract_strided_slice %138 {offsets = [0, 96], sizes = [8, 32], strides = [1, 1]} : vector<8x128xf32> to vector<8x32xf32>
    %143 = arith.mulf %140, %126 : vector<8x32xf32>
    %144 = arith.mulf %139, %141 : vector<8x32xf32>
    %145 = arith.addf %143, %144 : vector<8x32xf32>
    %146 = math.tanh %145 : vector<8x32xf32>
    %147 = arith.mulf %142, %146 : vector<8x32xf32>
    %148 = vector.extract_strided_slice %5 {offsets = [56, 0], sizes = [8, 128], strides = [1, 1]} : vector<64x128xf32> to vector<8x128xf32>
    %cst_23 = arith.constant dense<0.000000e+00> : vector<8x128xf32>
    %149 = tpu.matmul %147, %6, %cst_23 {dimension_numbers = #tpu.dot_dimension_numbers<[1], [0], [0], [1], [0, 0, 1, 1], [], []>} : vector<8x32xf32>, vector<32x128xf32>, vector<8x128xf32> -> vector<8x128xf32>
    %150 = arith.addf %148, %149 : vector<8x128xf32>
    %151 = arith.negf %150 : vector<8x128xf32>
    %152 = math.exp %151 : vector<8x128xf32>
    %cst_24 = arith.constant 1.000000e+00 : f32
    %153 = vector.broadcast %cst_24 : f32 to vector<8x128xf32>
    %154 = arith.addf %153, %152 : vector<8x128xf32>
    %155 = arith.divf %153, %154 : vector<8x128xf32>
    %156 = math.tanh %150 : vector<8x128xf32>
    %157 = arith.select %12, %156, %155 : vector<8x128xi1>, vector<8x128xf32>
    %158 = vector.extract_strided_slice %157 {offsets = [0, 0], sizes = [8, 32], strides = [1, 1]} : vector<8x128xf32> to vector<8x32xf32>
    %159 = vector.extract_strided_slice %157 {offsets = [0, 32], sizes = [8, 32], strides = [1, 1]} : vector<8x128xf32> to vector<8x32xf32>
    %160 = vector.extract_strided_slice %157 {offsets = [0, 64], sizes = [8, 32], strides = [1, 1]} : vector<8x128xf32> to vector<8x32xf32>
    %161 = vector.extract_strided_slice %157 {offsets = [0, 96], sizes = [8, 32], strides = [1, 1]} : vector<8x128xf32> to vector<8x32xf32>
    %162 = arith.mulf %159, %145 : vector<8x32xf32>
    %163 = arith.mulf %158, %160 : vector<8x32xf32>
    %164 = arith.addf %162, %163 : vector<8x32xf32>
    %165 = math.tanh %164 : vector<8x32xf32>
    %166 = arith.mulf %161, %165 : vector<8x32xf32>
    %167 = vector.extract_strided_slice %33 {offsets = [7, 0], sizes = [1, 32], strides = [1, 1]} : vector<8x32xf32> to vector<1x32xf32>
    %c0_25 = arith.constant 0 : index
    %c0_26 = arith.constant 0 : index
    %168 = vector.load %arg4[%c0_25, %c0_26] : memref<32x4xf32, #tpu.memory_space<vmem>>, vector<32x4xf32>
    %cst_27 = arith.constant dense<0.000000e+00> : vector<1x4xf32>
    %169 = tpu.matmul %167, %168, %cst_27 {dimension_numbers = #tpu.dot_dimension_numbers<[1], [0], [0], [1], [0, 0, 1, 1], [], []>} : vector<1x32xf32>, vector<32x4xf32>, vector<1x4xf32> -> vector<1x4xf32>
    %c0_28 = arith.constant 0 : index
    %c0_29 = arith.constant 0 : index
    %170 = vector.load %arg5[%c0_28, %c0_29] : memref<1x4xf32, #tpu.memory_space<vmem>>, vector<1x4xf32>
    %171 = arith.addf %169, %170 : vector<1x4xf32>
    %c0_30 = arith.constant 0 : index
    %c0_31 = arith.constant 0 : index
    %172 = vector.load %arg6[%c0_30, %c0_31] : memref<1x4xf32, #tpu.memory_space<vmem>>, vector<1x4xf32>
    tpu.vector_store %arg6[%c0_30, %c0_31], %171 {strides = array<i32>} : memref<1x4xf32, #tpu.memory_space<vmem>>, vector<1x4xf32>,
    %173 = tpu.concatenate %166, %164 in 0 : vector<8x32xf32>, vector<8x32xf32> -> vector<16x32xf32>
    %c0_32 = arith.constant 0 : index
    %c0_33 = arith.constant 0 : index
    %174 = vector.load %arg7[%c0_32, %c0_33] : memref<16x32xf32, #tpu.memory_space<vmem>>, vector<16x32xf32>
    tpu.vector_store %arg7[%c0_32, %c0_33], %173 {strides = array<i32>} : memref<16x32xf32, #tpu.memory_space<vmem>>, vector<16x32xf32>,
    return
  }
}

</mosaic_0001>

<bundles_post_ra>
// kernel: lstm_model_forward.1
= control target key start
LH: loop header
LB: loop body
LE: loop exit
PB: predicated region body
PF: predicated region fallthrough
CT: control target
= control target key end

     0   :  { %13 = vsyncpa [#allocation3], 0  ;;  %s1137_s0 = inlined_call_operand.hbm [shape: f32[64,32], index: 0, kind: input, shape index: {}]   ;;  %s1138_s1 = inlined_call_operand.vmem [shape: f32[32,128], index: 1, kind: input, shape index: {}]   ;;  %s1139_s2 = inlined_call_operand.hbm [shape: f32[32,128], index: 2, kind: input, shape index: {}]   ;;  %s1140_s3 = inlined_call_operand.vmem [shape: f32[1,128], index: 3, kind: input, shape index: {}]   ;;  %s1141_s4 = inlined_call_operand.vmem [shape: f32[32,4], index: 4, kind: input, shape index: {}]   ;;  %s1142_s5 = inlined_call_operand.vmem [shape: f32[1,4], index: 5, kind: input, shape index: {}]   ;;  %s1143_s6 = inlined_call_operand.hbm [shape: f32[1,4], index: 6, kind: output, shape index: {0}]   ;;  %s1144_s7 = inlined_call_operand.vmem [shape: f32[16,32], index: 7, kind: output, shape index: {1}]  }
   0x1   :  { %14 = vsyncpa [#allocation6], 0 }
   0x2   :  { %15 = vsyncpa [#allocation4], 0  ;;  %s20_s26 = sshll.u32 %s1137_s0, 4  ;;  %s908_s27 = smov [#allocation2]   ;;  %s21_s26 = int_to_ptr.hbm [resolvable:$true] %s20_s26 }
   0x3   :  { %s22_s28 = sshll.u32 %s908_s27, 4  ;;  %s35_s8 = sshll.u32 %s1139_s2, 4  ;;  %s23_s28 = int_to_ptr.vmem [resolvable:$true] %s22_s28  ;;  %s36_s8 = int_to_ptr.hbm [resolvable:$true] %s35_s8 }
   0x4   :  { %s909_s9 = smov 128   ;;  %s910_s10 = smov 8  }
   0x5   :  { %28 = dma.hbm_to_vmem [thread:$0]  %s21_s26, 1024, %s23_s28, [#allocation3], %s909_s9, %s909_s9, %s910_s10  }
   0x6   :  { %s911_s11 = smov [#allocation5]  }
   0x7   :  { %s37_s12 = sshll.u32 %s911_s11, 4  ;;  %s38_s12 = int_to_ptr.vmem [resolvable:$true] %s37_s12 }
   0x8   :  { %43 = dma.hbm_to_vmem [thread:$0]  %s36_s8, 512, %s38_s12, [#allocation6], %s909_s9, %s909_s9, %s910_s10  }
   0x9   :  { %902 = dma.done.wait [#allocation3], 1024  }
   0xa   :  { %903 = vsyncadd [#allocation3], 4294966272 }
   0xb   :  { %904 = dma.done.wait [#allocation6], 512  }
   0xc   :  { %905 = vsyncadd [#allocation6], 4294966784  ;;  %v69_v0 = vld [vmem:[%s1138_s1 + $0x18] sm:$0xff]  ;;  %v68_v1 = vld [vmem:[%s1138_s1 + $0x10] sm:$0xff]  ;;  %vm74_vm0 = vcmask 261120   ;;  %v912_v10 = vmov 0.0   ;;  %v144_v20 = vlaneseq }
   0xd   :  { %749 = vmatpush.msra.mxu1 %v69_v0  ;;  %111 = vmatpush.msra.mxu0 %v69_v0  ;;  %v968_v2 = vld [vmem:[#allocation5 + $0x18] sm:$0xff]  ;;  %v67_v3 = vld [vmem:[%s1138_s1 + $0x8] sm:$0xff]  ;;  %v974_v4 = vld [vmem:[#allocation5 + $0x10] sm:$0xff]  ;;  %s914_s20 = smov 32   ;;  %s710_s10 = sshll.u32 %s1143_s6, 4  ;;  %s711_s10 = int_to_ptr.hbm [resolvable:$true] %s710_s10 }
   0xe   :  { %750 = vmatpush.msra.mxu2 %v69_v0  ;;  %292 = vmatpush.msra.mxu3 %v968_v2  ;;  %v66_v5 = vld [vmem:[%s1138_s1] sm:$0xff]  ;;  %v63_v6 = vld [vmem:[#allocation2 + $0x28] sm:$0xff]  ;;  %v145_v22 = vand.u32 127, %v144_v20  ;;  %v64_v41 = vld [vmem:[#allocation2 + $0x30] sm:$0xff] }
   0xf   :  { %751 = vmatpush.msra.mxu1 %v68_v1  ;;  %112 = vmatpush.msra.mxu0 %v68_v1  ;;  %v980_v7 = vld [vmem:[#allocation5 + $0x8] sm:$0xff]  ;;  %v58_v8 = vld [vmem:[#allocation2] sm:$0xff]  ;;  %v65_v42 = vld [vmem:[#allocation2 + $0x38] sm:$0xff] }
  0x10   :  { %752 = vmatpush.msra.mxu2 %v68_v1  ;;  %293 = vmatpush.msra.mxu3 %v974_v4  ;;  %v986_v9 = vld [vmem:[#allocation5] sm:$0xff]  ;;  %vm146_vm1 = vcmp.ge.s32.totalorder %v145_v22, 64  ;;  %vm147_vm2 = vcmp.lt.s32.totalorder %v145_v22, 96  ;;  %v59_v45 = vld [vmem:[#allocation2 + $0x8] sm:$0xff] }
  0x11   :  { %753 = vmatpush.msra.mxu1 %v67_v3  ;;  %113 = vmatpush.msra.mxu0 %v67_v3  ;;  %v1013_v13 = vld [vmem:[%s1140_s3] ss:$0 sm:$0xff]  ;;  %vm1016_vm4 = vmand %vm146_vm1, %vm147_vm2  ;;  %s913_s3 = smov 64  }
  0x12   :  { %754 = vmatpush.msra.mxu2 %v67_v3  ;;  %294 = vmatpush.msra.mxu3 %v980_v7 }
  0x13   :  { %755 = vmatpush.msra.mxu1 %v66_v5  ;;  %114 = vmatpush.msra.mxu0 %v66_v5 }
  0x14   :  { %730 = vmatmul.msk.f32.vlgmr.msra.gmra.mxu1 %vm74_vm0, %v63_v6  ;;  %725 = vmatmul.msk.f32.vlgmr.msra.gmra.mxu0 %vm74_vm0, %v58_v8 }
  0x15   :  { %164 = vmatpush.msrb.mxu1 %v968_v2  ;;  %756 = vmatpush.msra.mxu2 %v66_v5 }
  0x16   :  { %295 = vmatpush.msra.mxu3 %v986_v9  ;;  %731 = vmatmul.msk.f32.vlgmr.msra.gmra.mxu2 %vm74_vm0, %v64_v41 }
  0x17   :  { %228 = vmatpush.msrb.mxu2 %v968_v2  ;;  %165 = vmatpush.msrb.mxu1 %v974_v4 }
  0x18   :  { %484 = vmatpush.msrb.mxu3 %v968_v2 }
  0x19   :  { %229 = vmatpush.msrb.mxu2 %v974_v4  ;;  %166 = vmatpush.msrb.mxu1 %v980_v7 }
  0x1a   :  { %485 = vmatpush.msrb.mxu3 %v974_v4 }
  0x1b   :  { %230 = vmatpush.msrb.mxu2 %v980_v7  ;;  %167 = vmatpush.msrb.mxu1 %v986_v9 }
  0x1c   :  { %486 = vmatpush.msrb.mxu3 %v980_v7  ;;  %168 = vmatmul.f32.vlgmr.msrb.gmra.mxu1 %v912_v10 }
  0x1d   :  { %231 = vmatpush.msrb.mxu2 %v986_v9  ;;  %356 = vmatpush.msra.mxu1 %v968_v2 }
  0x1e   :  { %487 = vmatpush.msrb.mxu3 %v986_v9  ;;  %732 = vmatmul.msk.f32.gmra.mxu2 %vm74_vm0, %v65_v42  ;;  %v61_v42 = vld [vmem:[#allocation2 + $0x18] sm:$0xff] }
  0x1f   :  { %357 = vmatpush.msra.mxu1 %v974_v4  ;;  %420 = vmatpush.msra.mxu2 %v968_v2 }
  0x20   :  { %726 = vmatmul.msk.f32.gmra.mxu0 %vm74_vm0, %v59_v45 }
  0x21   :  { %358 = vmatpush.msra.mxu1 %v980_v7  ;;  %421 = vmatpush.msra.mxu2 %v974_v4 }
  0x23   :  { %359 = vmatpush.msra.mxu1 %v986_v9  ;;  %422 = vmatpush.msra.mxu2 %v980_v7 }
  0x25   :  { %548 = vmatpush.msrb.mxu1 %v968_v2  ;;  %423 = vmatpush.msra.mxu2 %v986_v9 }
  0x27   :  { %549 = vmatpush.msrb.mxu1 %v974_v4 }
  0x29   :  { %550 = vmatpush.msrb.mxu1 %v980_v7 }
  0x2b   :  { %551 = vmatpush.msrb.mxu1 %v986_v9 }
  0x91   :  { %v1008_v11 = vpop.f32.mrf.mxu1  ;;  %v116_v12 = vpop.f32.mrf.mxu0 }
  0x92   :  { %v117_v14 = vadd.f32 %v1013_v13, %v116_v12 }
  0x99   :  { %v169_v15 = vpop.f32.mrf.mxu1  ;;  %v1041_v47 = vpop.f32.mrf.mxu2 }
  0x9a   :  { %v172_v16 = vadd.f32 %v169_v15, %v117_v14  ;;  %v60_v14 = vld [vmem:[#allocation2 + $0x10] sm:$0xff] }
  0x9b   :  { %727 = vmatmul.msk.f32.gmra.mxu0 %vm74_vm0, %v60_v14  ;;  %v62_v14 = vld [vmem:[#allocation2 + $0x20] sm:$0xff] }
  0x9c   :  { %v733_v17 = vmul.f32 -1.442695, %v172_v16 }
  0x9d   :  { %v119_v49 = vpop.f32.mrf.mxu0 }
  0x9e   :  { %766 = vpow2.f32 %v733_v17  ;;  %v120_v50 = vadd.f32 %v1013_v13, %v119_v49 }
  0xa1   :  { %v1043_v48 = vpop.f32.mrf.mxu2 }
  0xa3   :  { %728 = vmatmul.msk.f32.gmra.mxu0 %vm74_vm0, %v61_v42 }
  0xa4   :  { %v767_v18 = vpop.eup %766 }
  0xa5   :  { %v176_v19 = vadd.f32 1.0, %v767_v18 }
  0xa7   :  { %768 = vrcp.f32 %v176_v19  ;;  %v188_v25 = vand.u32 2147483648, %v176_v19  ;;  %v186_v27 = vand.u32 2147483647, %v176_v19  ;;  %vm182_vm5 = vweird.f32 %v176_v19 }
  0xa8   :  { %770 = vtanh.f32 %v172_v16 }
  0xa9   :  { %v189_v30 = vor.u32 1.1754944e-38, %v188_v25  ;;  %vm187_vm7 = vcmp.eq.f32.partialorder %v186_v27, 8.507059e+37 }
  0xab   :  { %729 = vmatmul.msk.f32.gmra.mxu0 %vm74_vm0, %v62_v14 }
  0xad   :  { %v769_v21 = vpop.eup %768 }
  0xae   :  { %v178_v23 = vmul.f32 %v769_v21, %v176_v19  ;;  %vm183_vm3 = vweird.f32 %v769_v21  ;;  %v771_v32 = vpop.eup %770 }
  0xaf   :  { %vm184_vm6 = vmor %vm182_vm5, %vm183_vm3 }
  0xb0   :  { %v179_v24 = vsub.f32 1.0, %v178_v23 }
  0xb2   :  { %v180_v26 = vmul.f32 %v769_v21, %v179_v24 }
  0xb4   :  { %v181_v29 = vadd.f32 %v769_v21, %v180_v26 }
  0xb6   :  { %v185_v31 = vsel %vm184_vm6, %v769_v21, %v181_v29 }
  0xb7   :  { %v190_v33 = vsel %vm187_vm7, %v189_v30, %v185_v31 }
  0xb8   :  { %v193_v34 = vsel %vm1016_vm4, %v771_v32, %v190_v33 }
  0xb9   :  { %196 = vrot.lane.b32.xlu0 %v193_v34, %s913_s3  ;;  %v194_v37 = vmul.f32 0.0, %v193_v34 }
 0x118   :  { %v122_v16 = vpop.f32.mrf.mxu0 }
 0x119   :  { %v123_v17 = vadd.f32 %v1013_v13, %v122_v16 }
 0x120   :  { %v125_v49 = vpop.f32.mrf.mxu0 }
 0x128   :  { %v128_v16 = vpop.f32.mrf.mxu0 }
 0x12b   :  { %v197_v35 = vpop.permute.xlu0 %196 }
 0x12c   :  { %v199_v36 = vmul.f32 %v197_v35, %v193_v34 }
 0x12e   :  { %201 = vrot.lane.b32.xlu0 %v199_v36, %s914_s20 }
 0x1a0   :  { %v202_v38 = vpop.permute.xlu0 %201 }
 0x1a1   :  { %v204_v39 = vadd.f32 %v202_v38, %v194_v37 }
 0x1a3   :  { %772 = vtanh.f32 %v204_v39 }
 0x1a9   :  { %v773_v40 = vpop.eup %772 }
 0x1aa   :  { %207 = vrot.lane.b32.xlu1 %v773_v40, %s913_s3 }
 0x21c   :  { %v208_v43 = vpop.permute.xlu1 %207 }
 0x21d   :  { %v1031_v44 = vmul.f32 %v208_v43, %v193_v34 }
 0x21f   :  { %212 = vrot.lane.b32.xlu1 %v1031_v44, %s914_s20 }
 0x291   :  { %v213_v46 = vpop.permute.xlu1 %212 }
 0x292   :  { %734 = vmatmul.msk.f32.vlgmr.msrb.gmra.mxu2 %vm74_vm0, %v213_v46 }
 0x293   :  { %612 = vmatpush.msrb.mxu2 %v968_v2 }
 0x295   :  { %613 = vmatpush.msrb.mxu2 %v974_v4 }
 0x297   :  { %614 = vmatpush.msrb.mxu2 %v980_v7 }
 0x299   :  { %615 = vmatpush.msrb.mxu2 %v986_v9 }
 0x315   :  { %v233_v51 = vpop.f32.mrf.mxu2 }
 0x316   :  { %v236_v52 = vadd.f32 %v233_v51, %v120_v50  ;;  %v126_v50 = vadd.f32 %v1013_v13, %v125_v49 }
 0x318   :  { %v735_v53 = vmul.f32 -1.442695, %v236_v52 }
 0x31a   :  { %774 = vpow2.f32 %v735_v53 }
 0x320   :  { %v775_v54 = vpop.eup %774 }
 0x321   :  { %v240_v55 = vadd.f32 1.0, %v775_v54 }
 0x323   :  { %776 = vrcp.f32 %v240_v55  ;;  %v252_v59 = vand.u32 2147483648, %v240_v55  ;;  %v250_v61 = vand.u32 2147483647, %v240_v55  ;;  %vm246_vm9 = vweird.f32 %v240_v55 }
 0x324   :  { %778 = vtanh.f32 %v236_v52 }
 0x325   :  { %v253_v63 = vor.u32 1.1754944e-38, %v252_v59  ;;  %vm251_vm11 = vcmp.eq.f32.partialorder %v250_v61, 8.507059e+37 }
 0x329   :  { %v777_v56 = vpop.eup %776 }
 0x32a   :  { %v242_v57 = vmul.f32 %v777_v56, %v240_v55  ;;  %vm247_vm8 = vweird.f32 %v777_v56  ;;  %v779_v1 = vpop.eup %778 }
 0x32b   :  { %vm248_vm10 = vmor %vm246_vm9, %vm247_vm8 }
 0x32c   :  { %v243_v58 = vsub.f32 1.0, %v242_v57 }
 0x32e   :  { %v244_v60 = vmul.f32 %v777_v56, %v243_v58 }
 0x330   :  { %v245_v62 = vadd.f32 %v777_v56, %v244_v60 }
 0x332   :  { %v249_v0 = vsel %vm248_vm10, %v777_v56, %v245_v62 }
 0x333   :  { %v254_v2 = vsel %vm251_vm11, %v253_v63, %v249_v0 }
 0x334   :  { %v257_v3 = vsel %vm1016_vm4, %v779_v1, %v254_v2 }
 0x335   :  { %260 = vrot.lane.b32.xlu2 %v257_v3, %s913_s3  ;;  %v258_v6 = vmul.f32 %v257_v3, %v204_v39 }
 0x38f   :  { %v261_v4 = vpop.permute.xlu2 %260 }
 0x390   :  { %v263_v5 = vmul.f32 %v261_v4, %v257_v3 }
 0x392   :  { %265 = vrot.lane.b32.xlu2 %v263_v5, %s914_s20 }
 0x3ec   :  { %v266_v7 = vpop.permute.xlu2 %265 }
 0x3ed   :  { %v268_v8 = vadd.f32 %v266_v7, %v258_v6 }
 0x3ef   :  { %780 = vtanh.f32 %v268_v8 }
 0x3f5   :  { %v781_v9 = vpop.eup %780 }
 0x3f6   :  { %271 = vrot.lane.b32.xlu0 %v781_v9, %s913_s3 }
 0x468   :  { %v272_v10 = vpop.permute.xlu0 %271 }
 0x469   :  { %v274_v12 = vmul.f32 %v272_v10, %v257_v3 }
 0x46b   :  { %276 = vrot.lane.b32.xlu1 %v274_v12, %s914_s20 }
 0x4dd   :  { %v277_v15 = vpop.permute.xlu1 %276 }
 0x4de   :  { %736 = vmatmul.msk.f32.vlgmr.msra.gmra.mxu3 %vm74_vm0, %v277_v15 }
 0x561   :  { %v297_v18 = vpop.f32.mrf.mxu3 }
 0x562   :  { %v300_v19 = vadd.f32 %v297_v18, %v123_v17  ;;  %v129_v17 = vadd.f32 %v1013_v13, %v128_v16 }
 0x564   :  { %v737_v20 = vmul.f32 -1.442695, %v300_v19 }
 0x566   :  { %782 = vpow2.f32 %v737_v20 }
 0x56c   :  { %v783_v21 = vpop.eup %782 }
 0x56d   :  { %v304_v22 = vadd.f32 1.0, %v783_v21 }
 0x56f   :  { %784 = vrcp.f32 %v304_v22  ;;  %v316_v26 = vand.u32 2147483648, %v304_v22  ;;  %v314_v29 = vand.u32 2147483647, %v304_v22  ;;  %vm310_vm13 = vweird.f32 %v304_v22 }
 0x570   :  { %786 = vtanh.f32 %v300_v19 }
 0x571   :  { %v317_v31 = vor.u32 1.1754944e-38, %v316_v26  ;;  %vm315_vm15 = vcmp.eq.f32.partialorder %v314_v29, 8.507059e+37 }
 0x575   :  { %v785_v23 = vpop.eup %784 }
 0x576   :  { %v306_v24 = vmul.f32 %v785_v23, %v304_v22  ;;  %vm311_vm12 = vweird.f32 %v785_v23  ;;  %v787_v33 = vpop.eup %786 }
 0x577   :  { %vm312_vm14 = vmor %vm310_vm13, %vm311_vm12 }
 0x578   :  { %v307_v25 = vsub.f32 1.0, %v306_v24 }
 0x57a   :  { %v308_v27 = vmul.f32 %v785_v23, %v307_v25 }
 0x57c   :  { %v309_v30 = vadd.f32 %v785_v23, %v308_v27 }
 0x57e   :  { %v313_v32 = vsel %vm312_vm14, %v785_v23, %v309_v30 }
 0x57f   :  { %v318_v34 = vsel %vm315_vm15, %v317_v31, %v313_v32 }
 0x580   :  { %v321_v35 = vsel %vm1016_vm4, %v787_v33, %v318_v34 }
 0x581   :  { %324 = vrot.lane.b32.xlu2 %v321_v35, %s913_s3  ;;  %v322_v38 = vmul.f32 %v321_v35, %v268_v8 }
 0x5db   :  { %v325_v36 = vpop.permute.xlu2 %324 }
 0x5dc   :  { %v327_v37 = vmul.f32 %v325_v36, %v321_v35 }
 0x5de   :  { %329 = vrot.lane.b32.xlu0 %v327_v37, %s914_s20 }
 0x650   :  { %v330_v39 = vpop.permute.xlu0 %329 }
 0x651   :  { %v332_v40 = vadd.f32 %v330_v39, %v322_v38 }
 0x653   :  { %788 = vtanh.f32 %v332_v40 }
 0x659   :  { %v789_v41 = vpop.eup %788 }
 0x65a   :  { %335 = vrot.lane.b32.xlu1 %v789_v41, %s913_s3 }
 0x6cc   :  { %v336_v43 = vpop.permute.xlu1 %335 }
 0x6cd   :  { %v338_v45 = vmul.f32 %v336_v43, %v321_v35 }
 0x6cf   :  { %340 = vrot.lane.b32.xlu2 %v338_v45, %s914_s20 }
 0x729   :  { %v341_v46 = vpop.permute.xlu2 %340 }
 0x72a   :  { %738 = vmatmul.msk.f32.vlgmr.msra.gmra.mxu1 %vm74_vm0, %v341_v46  ;;  %v132_v46 = vadd.f32 %v1013_v13, %v1008_v11 }
 0x7a7   :  { %v361_v51 = vpop.f32.mrf.mxu1 }
 0x7a8   :  { %v364_v52 = vadd.f32 %v361_v51, %v126_v50 }
 0x7aa   :  { %v739_v53 = vmul.f32 -1.442695, %v364_v52 }
 0x7ac   :  { %790 = vpow2.f32 %v739_v53 }
 0x7b2   :  { %v791_v54 = vpop.eup %790 }
 0x7b3   :  { %v368_v55 = vadd.f32 1.0, %v791_v54 }
 0x7b5   :  { %792 = vrcp.f32 %v368_v55  ;;  %v380_v59 = vand.u32 2147483648, %v368_v55  ;;  %v378_v61 = vand.u32 2147483647, %v368_v55  ;;  %vm374_vm2 = vweird.f32 %v368_v55 }
 0x7b6   :  { %794 = vtanh.f32 %v364_v52 }
 0x7b7   :  { %v381_v63 = vor.u32 1.1754944e-38, %v380_v59  ;;  %vm379_vm5 = vcmp.eq.f32.partialorder %v378_v61, 8.507059e+37 }
 0x7bb   :  { %v793_v56 = vpop.eup %792 }
 0x7bc   :  { %v370_v57 = vmul.f32 %v793_v56, %v368_v55  ;;  %vm375_vm1 = vweird.f32 %v793_v56  ;;  %v795_v1 = vpop.eup %794 }
 0x7bd   :  { %vm376_vm3 = vmor %vm374_vm2, %vm375_vm1 }
 0x7be   :  { %v371_v58 = vsub.f32 1.0, %v370_v57 }
 0x7c0   :  { %v372_v60 = vmul.f32 %v793_v56, %v371_v58 }
 0x7c2   :  { %v373_v62 = vadd.f32 %v793_v56, %v372_v60 }
 0x7c4   :  { %v377_v0 = vsel %vm376_vm3, %v793_v56, %v373_v62  ;;  %vm689_vm3 = vcmask 24576  }
 0x7c5   :  { %v382_v2 = vsel %vm379_vm5, %v381_v63, %v377_v0 }
 0x7c6   :  { %v385_v3 = vsel %vm1016_vm4, %v795_v1, %v382_v2 }
 0x7c7   :  { %388 = vrot.lane.b32.xlu0 %v385_v3, %s913_s3  ;;  %v386_v6 = vmul.f32 %v385_v3, %v332_v40 }
 0x839   :  { %v389_v4 = vpop.permute.xlu0 %388 }
 0x83a   :  { %v391_v5 = vmul.f32 %v389_v4, %v385_v3 }
 0x83c   :  { %393 = vrot.lane.b32.xlu1 %v391_v5, %s914_s20 }
 0x8ae   :  { %v394_v7 = vpop.permute.xlu1 %393 }
 0x8af   :  { %v396_v8 = vadd.f32 %v394_v7, %v386_v6 }
 0x8b1   :  { %796 = vtanh.f32 %v396_v8 }
 0x8b7   :  { %v797_v9 = vpop.eup %796 }
 0x8b8   :  { %399 = vrot.lane.b32.xlu2 %v797_v9, %s913_s3 }
 0x912   :  { %v400_v10 = vpop.permute.xlu2 %399 }
 0x913   :  { %v402_v12 = vmul.f32 %v400_v10, %v385_v3  ;;  %v135_v10 = vadd.f32 %v1013_v13, %v1041_v47 }
 0x915   :  { %404 = vrot.lane.b32.xlu0 %v402_v12, %s914_s20 }
 0x987   :  { %v405_v15 = vpop.permute.xlu0 %404 }
 0x988   :  { %740 = vmatmul.msk.f32.vlgmr.msra.gmra.mxu2 %vm74_vm0, %v405_v15 }
 0xa0b   :  { %v425_v18 = vpop.f32.mrf.mxu2 }
 0xa0c   :  { %v428_v19 = vadd.f32 %v425_v18, %v129_v17 }
 0xa0e   :  { %v741_v20 = vmul.f32 -1.442695, %v428_v19 }
 0xa10   :  { %798 = vpow2.f32 %v741_v20 }
 0xa16   :  { %v799_v21 = vpop.eup %798 }
 0xa17   :  { %v432_v22 = vadd.f32 1.0, %v799_v21 }
 0xa19   :  { %800 = vrcp.f32 %v432_v22  ;;  %v444_v26 = vand.u32 2147483648, %v432_v22  ;;  %v442_v29 = vand.u32 2147483647, %v432_v22  ;;  %vm438_vm7 = vweird.f32 %v432_v22 }
 0xa1a   :  { %802 = vtanh.f32 %v428_v19 }
 0xa1b   :  { %v445_v31 = vor.u32 1.1754944e-38, %v444_v26  ;;  %vm443_vm9 = vcmp.eq.f32.partialorder %v442_v29, 8.507059e+37 }
 0xa1f   :  { %v801_v23 = vpop.eup %800 }
 0xa20   :  { %v434_v24 = vmul.f32 %v801_v23, %v432_v22  ;;  %vm439_vm6 = vweird.f32 %v801_v23  ;;  %v803_v33 = vpop.eup %802 }
 0xa21   :  { %vm440_vm8 = vmor %vm438_vm7, %vm439_vm6 }
 0xa22   :  { %v435_v25 = vsub.f32 1.0, %v434_v24 }
 0xa24   :  { %v436_v27 = vmul.f32 %v801_v23, %v435_v25 }
 0xa26   :  { %v437_v30 = vadd.f32 %v801_v23, %v436_v27 }
 0xa28   :  { %v441_v32 = vsel %vm440_vm8, %v801_v23, %v437_v30 }
 0xa29   :  { %v446_v34 = vsel %vm443_vm9, %v445_v31, %v441_v32  ;;  %v664_v32 = vrot.slane %v1031_v44, 7  ;;  %v659_v44 = vld [vmem:[%s1141_s4] sm:$0xff] }
 0xa2a   :  { %v449_v35 = vsel %vm1016_vm4, %v803_v33, %v446_v34  ;;  %v662_v33 = vld [vmem:[%s1141_s4 + $0x18] sm:$0xff]  ;;  %v661_v34 = vld [vmem:[%s1141_s4 + $0x10] sm:$0xff] }
 0xa2b   :  { %452 = vrot.lane.b32.xlu1 %v449_v35, %s913_s3  ;;  %v450_v38 = vmul.f32 %v449_v35, %v396_v8  ;;  %681 = vmatpush.msra.mxu3 %v662_v33 }
 0xa2d   :  { %682 = vmatpush.msra.mxu3 %v661_v34 }
 0xa9d   :  { %v453_v36 = vpop.permute.xlu1 %452 }
 0xa9e   :  { %v455_v37 = vmul.f32 %v453_v36, %v449_v35 }
 0xaa0   :  { %457 = vrot.lane.b32.xlu2 %v455_v37, %s914_s20 }
 0xafa   :  { %v458_v39 = vpop.permute.xlu2 %457 }
 0xafb   :  { %v460_v40 = vadd.f32 %v458_v39, %v450_v38 }
 0xafd   :  { %804 = vtanh.f32 %v460_v40 }
 0xb03   :  { %v805_v41 = vpop.eup %804 }
 0xb04   :  { %463 = vrot.lane.b32.xlu0 %v805_v41, %s913_s3 }
 0xb76   :  { %v464_v42 = vpop.permute.xlu0 %463 }
 0xb77   :  { %v466_v43 = vmul.f32 %v464_v42, %v449_v35  ;;  %v660_v35 = vld [vmem:[%s1141_s4 + $0x8] sm:$0xff]  ;;  %s915_s4 = smov [#allocation7]  }
 0xb78   :  { %683 = vmatpush.msra.mxu3 %v660_v35 }
 0xb79   :  { %468 = vrot.lane.b32.xlu1 %v466_v43, %s914_s20  ;;  %v663_v43 = vld [vmem:[%s1142_s5] sm:$0x1]  ;;  %s708_s5 = sshll.u32 %s915_s4, 4  ;;  %s709_s5 = int_to_ptr.vmem [resolvable:$true] %s708_s5 }
 0xb7a   :  { %684 = vmatpush.msra.mxu3 %v659_v44 }
 0xbeb   :  { %v469_v45 = vpop.permute.xlu1 %468 }
 0xbec   :  { %742 = vmatmul.msk.f32.vlgmr.msrb.gmra.mxu3 %vm74_vm0, %v469_v45 }
 0xc6f   :  { %v489_v49 = vpop.f32.mrf.mxu3 }
 0xc70   :  { %v492_v50 = vadd.f32 %v489_v49, %v132_v46 }
 0xc72   :  { %v743_v51 = vmul.f32 -1.442695, %v492_v50 }
 0xc74   :  { %806 = vpow2.f32 %v743_v51 }
 0xc7a   :  { %v807_v52 = vpop.eup %806 }
 0xc7b   :  { %v496_v53 = vadd.f32 1.0, %v807_v52 }
 0xc7d   :  { %808 = vrcp.f32 %v496_v53  ;;  %v508_v57 = vand.u32 2147483648, %v496_v53  ;;  %v506_v59 = vand.u32 2147483647, %v496_v53  ;;  %vm502_vm11 = vweird.f32 %v496_v53 }
 0xc7e   :  { %810 = vtanh.f32 %v492_v50  ;;  %v138_v50 = vadd.f32 %v1013_v13, %v1043_v48 }
 0xc7f   :  { %v509_v61 = vor.u32 1.1754944e-38, %v508_v57  ;;  %vm507_vm13 = vcmp.eq.f32.partialorder %v506_v59, 8.507059e+37 }
 0xc83   :  { %v809_v54 = vpop.eup %808 }
 0xc84   :  { %v498_v55 = vmul.f32 %v809_v54, %v496_v53  ;;  %vm503_vm10 = vweird.f32 %v809_v54  ;;  %v811_v62 = vpop.eup %810 }
 0xc85   :  { %vm504_vm12 = vmor %vm502_vm11, %vm503_vm10 }
 0xc86   :  { %v499_v56 = vsub.f32 1.0, %v498_v55 }
 0xc88   :  { %v500_v58 = vmul.f32 %v809_v54, %v499_v56 }
 0xc8a   :  { %v501_v60 = vadd.f32 %v809_v54, %v500_v58 }
 0xc8c   :  { %v505_v11 = vsel %vm504_vm12, %v809_v54, %v501_v60 }
 0xc8d   :  { %v510_v63 = vsel %vm507_vm13, %v509_v61, %v505_v11 }
 0xc8e   :  { %v513_v0 = vsel %vm1016_vm4, %v811_v62, %v510_v63 }
 0xc8f   :  { %516 = vrot.lane.b32.xlu2 %v513_v0, %s913_s3  ;;  %v514_v3 = vmul.f32 %v513_v0, %v460_v40 }
 0xce9   :  { %v517_v1 = vpop.permute.xlu2 %516 }
 0xcea   :  { %v519_v2 = vmul.f32 %v517_v1, %v513_v0 }
 0xcec   :  { %521 = vrot.lane.b32.xlu0 %v519_v2, %s914_s20 }
 0xd5e   :  { %v522_v4 = vpop.permute.xlu0 %521 }
 0xd5f   :  { %v524_v5 = vadd.f32 %v522_v4, %v514_v3 }
 0xd61   :  { %812 = vtanh.f32 %v524_v5 }
 0xd67   :  { %v813_v6 = vpop.eup %812 }
 0xd68   :  { %527 = vrot.lane.b32.xlu1 %v813_v6, %s913_s3 }
 0xdda   :  { %v528_v7 = vpop.permute.xlu1 %527 }
 0xddb   :  { %v530_v8 = vmul.f32 %v528_v7, %v513_v0 }
 0xddd   :  { %532 = vrot.lane.b32.xlu2 %v530_v8, %s914_s20 }
 0xe37   :  { %v533_v9 = vpop.permute.xlu2 %532 }
 0xe38   :  { %744 = vmatmul.msk.f32.vlgmr.msrb.gmra.mxu1 %vm74_vm0, %v533_v9 }
 0xeb5   :  { %v553_v12 = vpop.f32.mrf.mxu1 }
 0xeb6   :  { %v556_v14 = vadd.f32 %v553_v12, %v135_v10 }
 0xeb8   :  { %v745_v15 = vmul.f32 -1.442695, %v556_v14 }
 0xeba   :  { %814 = vpow2.f32 %v745_v15 }
 0xec0   :  { %v815_v16 = vpop.eup %814 }
 0xec1   :  { %v560_v17 = vadd.f32 1.0, %v815_v16 }
 0xec3   :  { %816 = vrcp.f32 %v560_v17  ;;  %v572_v21 = vand.u32 2147483648, %v560_v17  ;;  %v570_v23 = vand.u32 2147483647, %v560_v17  ;;  %vm566_vm15 = vweird.f32 %v560_v17 }
 0xec4   :  { %818 = vtanh.f32 %v556_v14 }
 0xec5   :  { %v573_v25 = vor.u32 1.1754944e-38, %v572_v21  ;;  %vm571_vm2 = vcmp.eq.f32.partialorder %v570_v23, 8.507059e+37 }
 0xec9   :  { %v817_v18 = vpop.eup %816 }
 0xeca   :  { %v562_v19 = vmul.f32 %v817_v18, %v560_v17  ;;  %vm567_vm14 = vweird.f32 %v817_v18  ;;  %v819_v26 = vpop.eup %818 }
 0xecb   :  { %vm568_vm1 = vmor %vm566_vm15, %vm567_vm14 }
 0xecc   :  { %v563_v20 = vsub.f32 1.0, %v562_v19 }
 0xece   :  { %v564_v22 = vmul.f32 %v817_v18, %v563_v20 }
 0xed0   :  { %v565_v24 = vadd.f32 %v817_v18, %v564_v22 }
 0xed2   :  { %v569_v47 = vsel %vm568_vm1, %v817_v18, %v565_v24 }
 0xed3   :  { %v574_v27 = vsel %vm571_vm2, %v573_v25, %v569_v47 }
 0xed4   :  { %v577_v29 = vsel %vm1016_vm4, %v819_v26, %v574_v27 }
 0xed5   :  { %580 = vrot.lane.b32.xlu0 %v577_v29, %s913_s3  ;;  %v578_v36 = vmul.f32 %v577_v29, %v524_v5 }
 0xf47   :  { %v581_v30 = vpop.permute.xlu0 %580 }
 0xf48   :  { %v583_v31 = vmul.f32 %v581_v30, %v577_v29 }
 0xf4a   :  { %585 = vrot.lane.b32.xlu1 %v583_v31, %s914_s20 }
 0xf52   :  { %665 = vrot.lane.b32.xlu1 %v664_v32, %s914_s20 }
 0xfbc   :  { %v586_v37 = vpop.permute.xlu1 %585 }
 0xfbd   :  { %v588_v38 = vadd.f32 %v586_v37, %v578_v36 }
 0xfbf   :  { %820 = vtanh.f32 %v588_v38 }
 0xfc4   :  { %v666_v39 = vpop.permute.xlu1 %665 }
 0xfc5   :  { %v821_v40 = vpop.eup %820  ;;  %748 = vmatmul.msk.f32.vlgmr.msra.gmra.mxu3 %vm74_vm0, %v666_v39 }
 0xfc6   :  { %591 = vrot.lane.b32.xlu2 %v821_v40, %s913_s3 }
0x1020   :  { %v592_v41 = vpop.permute.xlu2 %591 }
0x1021   :  { %v594_v42 = vmul.f32 %v592_v41, %v577_v29 }
0x1023   :  { %596 = vrot.lane.b32.xlu0 %v594_v42, %s914_s20 }
0x1048   :  { %v686_v45 = vpop.f32.mrf.mxu3 }
0x1049   :  { %v687_v46 = vadd.f32 %v686_v45, %v663_v43 }
0x104b   :  { %690 = vst.msk [vmem:[#allocation7] sm:$0x1] %vm689_vm3, %v687_v46 }
0x104c   :  { %713 = dma.vmem_to_hbm [thread:$0]  %s709_s5, 16, %s711_s10, [#allocation4]  }
0x1095   :  { %v597_v49 = vpop.permute.xlu0 %596 }
0x1096   :  { %746 = vmatmul.msk.f32.vlgmr.msrb.gmra.mxu2 %vm74_vm0, %v597_v49 }
0x1119   :  { %v617_v51 = vpop.f32.mrf.mxu2 }
0x111a   :  { %v620_v52 = vadd.f32 %v617_v51, %v138_v50 }
0x111c   :  { %v747_v53 = vmul.f32 -1.442695, %v620_v52 }
0x111e   :  { %822 = vpow2.f32 %v747_v53 }
0x1124   :  { %v823_v54 = vpop.eup %822 }
0x1125   :  { %v624_v55 = vadd.f32 1.0, %v823_v54 }
0x1127   :  { %824 = vrcp.f32 %v624_v55  ;;  %v636_v59 = vand.u32 2147483648, %v624_v55  ;;  %v634_v61 = vand.u32 2147483647, %v624_v55  ;;  %vm630_vm6 = vweird.f32 %v624_v55 }
0x1128   :  { %826 = vtanh.f32 %v620_v52 }
0x1129   :  { %v637_v62 = vor.u32 1.1754944e-38, %v636_v59  ;;  %vm635_vm8 = vcmp.eq.f32.partialorder %v634_v61, 8.507059e+37 }
0x112d   :  { %v825_v56 = vpop.eup %824 }
0x112e   :  { %v626_v57 = vmul.f32 %v825_v56, %v624_v55  ;;  %vm631_vm5 = vweird.f32 %v825_v56  ;;  %v827_v48 = vpop.eup %826 }
0x112f   :  { %vm632_vm7 = vmor %vm630_vm6, %vm631_vm5 }
0x1130   :  { %v627_v58 = vsub.f32 1.0, %v626_v57 }
0x1132   :  { %v628_v60 = vmul.f32 %v825_v56, %v627_v58 }
0x1134   :  { %v629_v11 = vadd.f32 %v825_v56, %v628_v60 }
0x1136   :  { %v633_v13 = vsel %vm632_vm7, %v825_v56, %v629_v11 }
0x1137   :  { %v638_v63 = vsel %vm635_vm8, %v637_v62, %v633_v13 }
0x1138   :  { %v641_v0 = vsel %vm1016_vm4, %v827_v48, %v638_v63 }
0x1139   :  { %644 = vrot.lane.b32.xlu2 %v641_v0, %s913_s3  ;;  %v642_v3 = vmul.f32 %v641_v0, %v588_v38 }
0x1193   :  { %v645_v1 = vpop.permute.xlu2 %644 }
0x1194   :  { %v647_v2 = vmul.f32 %v645_v1, %v641_v0 }
0x1196   :  { %649 = vrot.lane.b32.xlu0 %v647_v2, %s914_s20 }
0x1208   :  { %v650_v4 = vpop.permute.xlu0 %649 }
0x1209   :  { %v652_v5 = vadd.f32 %v650_v4, %v642_v3 }
0x120b   :  { %828 = vtanh.f32 %v652_v5  ;;  %692 = vrot.lane.b32.xlu2 %v652_v5, %s913_s3 }
0x1211   :  { %v829_v6 = vpop.eup %828 }
0x1212   :  { %655 = vrot.lane.b32.xlu1 %v829_v6, %s913_s3 }
0x1265   :  { %v693_v7 = vpop.permute.xlu2 %692 }
0x1266   :  { %697 = vrot.lane.b32.xlu1 %v693_v7, %s914_s20 }
0x1284   :  { %v656_v28 = vpop.permute.xlu1 %655 }
0x1285   :  { %v658_v8 = vmul.f32 %v656_v28, %v641_v0 }
0x1287   :  { %695 = vrot.lane.b32.xlu0 %v658_v8, %s914_s20 }
0x12d8   :  { %v698_v9 = vpop.permute.xlu1 %697 }
0x12d9   :  { %702 = vst.msk [vmem:[%s1144_s7 + $0x8] sm:$0xff] %vm74_vm0, %v698_v9 }
0x12f9   :  { %v696_v10 = vpop.permute.xlu0 %695 }
0x12fa   :  { %701 = vst.msk [vmem:[%s1144_s7] sm:$0xff] %vm74_vm0, %v696_v10 }
0x12fb   :  { %906 = dma.done.wait [#allocation4], 16  }
0x12fc   :  { %907 = vsyncadd [#allocation4], 4294967280 }
0x12fd   :  { %722 = vsyncpa [#allocation3], 1 }
0x12fe   :  { %723 = vsyncpa [#allocation6], 1 }
0x12ff   :  { %724 = vsyncpa [#allocation4], 1 }

</bundles_post_ra>
